<compile_context>
chip_gen: v7x
topology: tpu7x:2x2x1
jax: 0.10.0
libtpu: 0.0.40
codegen_flags: <defaults>
</compile_context>

<pallas_src>
import numpy as np
import jax
import jax.numpy as jnp
from jax import lax
from jax.experimental import pallas as pl
from jax.experimental.pallas import tpu as pltpu

# ---- synthetic module configuration -------------------------------------------------
NUM_AA = 21          # one-hot alphabet size (BaseModel.embed scatters into 21 channels)
HIDDEN = 32          # hidden size of the synthetic emission model ("self.model")
MIX = 64             # soft_to_angle mixture size
EPS = 1e-4           # eps added to cos term, as in openprotein soft_to_angle
LUT_ROWS = 16        # 9 rows used: [phi,psi,omega, pt_y(3), pt_z(3)]; padded to 16

# dihedral_to_point constants (picometers / radians, as in openprotein util)
BOND_LENGTHS = np.array([145.801, 152.326, 132.868], dtype=np.float32)
BOND_ANGLES = np.array([2.124, 1.941, 2.028], dtype=np.float32)
R_COS_THETA = (BOND_LENGTHS * np.cos(np.pi - BOND_ANGLES)).astype(np.float32)  # (3,)
R_SIN_THETA = (BOND_LENGTHS * np.sin(np.pi - BOND_ANGLES)).astype(np.float32)  # (3,)


# ---- Pallas kernel: per-residue LUT gather (lane-dense output) -----------------------
def _lookup_kernel(ids_ref, lut_ref, out_ref):
    # ids: (1, TILE) int32 on the lane axis; lut: (16, 21) f32.
    ids = ids_ref[...]
    aa = lax.broadcasted_iota(jnp.int32, (NUM_AA, ids.shape[1]), 0)     # (21, TILE)
    onehot = (aa == ids).astype(jnp.float32)                            # (21, TILE)
    # (16, 21) @ (21, TILE) -> (16, TILE): exact row gather via one-hot matmul.
    out_ref[...] = jnp.dot(lut_ref[...], onehot,
                           preferred_element_type=jnp.float32)


def _lookup(ids_2d, lut_t, *, tile):
    n_pad = ids_2d.shape[1]
    return pl.pallas_call(
        _lookup_kernel,
        out_shape=jax.ShapeDtypeStruct((LUT_ROWS, n_pad), jnp.float32),
        grid_spec=pltpu.PrefetchScalarGridSpec(
            num_scalar_prefetch=0,
            grid=(n_pad // tile,),
            in_specs=[
                pl.BlockSpec((1, tile), lambda i: (0, i)),
                pl.BlockSpec((LUT_ROWS, NUM_AA), lambda i: (0, 0)),
            ],
            out_specs=pl.BlockSpec((LUT_ROWS, tile), lambda i: (0, i)),
        ),
        compiler_params=pltpu.CompilerParams(dimension_semantics=("parallel",)),
    )(ids_2d, lut_t)


# ---- geometry helpers (plain JAX) ----------------------------------------------------
def _normalize(v):
    return v / jnp.maximum(jnp.linalg.norm(v, axis=-1, keepdims=True), 1e-12)


def _frame(pa, pb, pc):
    # Columns [bc, n x bc, n] of the NeRF extension frame; works on (..., 3) stacks.
    bc = _normalize(pc - pb)
    n = _normalize(jnp.cross(pb - pa, bc))
    return jnp.stack([bc, jnp.cross(n, bc), n], axis=-1)


# canonical seed triple: its frame is the identity with origin 0 (pNeRF convention)
_INIT_A = np.array([-np.sqrt(0.5), np.sqrt(1.5), 0.0], dtype=np.float32)
_INIT_B = np.array([-np.sqrt(2.0), 0.0, 0.0], dtype=np.float32)


def _extend_scan(points):
    """Sequential NeRF extension of points (steps, batch, 3) from the canonical seed."""
    _, bsz, _ = points.shape
    a0 = jnp.broadcast_to(jnp.asarray(_INIT_A), (bsz, 3))
    b0 = jnp.broadcast_to(jnp.asarray(_INIT_B), (bsz, 3))
    c0 = jnp.zeros((bsz, 3), jnp.float32)

    def step(carry, p):
        pa, pb, pc = carry
        m = _frame(pa, pb, pc)
        coord = jnp.einsum("bij,bj->bi", m, p) + pc
        return (pb, pc, coord), coord

    _, coords = lax.scan(step, (a0, b0, c0), points)
    return coords


def _point_to_coordinate_serial(points):
    """Reference: fully serial recursion over all 3L steps (openprotein convention)."""
    t, b, _ = points.shape
    coords = _extend_scan(points)
    return jnp.concatenate([jnp.zeros((1, b, 3), coords.dtype), coords[: t - 1]], axis=0)


def _point_to_coordinate_pnerf(points, num_fragments=6):
    """pNeRF fragment-parallel point_to_coordinate (matches the serial scan)."""
    t, b, _ = points.shape
    f = max(1, min(num_fragments, t // 3))        # keep >= 3 points per fragment
    frag_len = -(-t // f)
    pts = jnp.pad(points, ((0, f * frag_len - t), (0, 0), (0, 0)))
    pts = pts.reshape(f, frag_len, b, 3).transpose(1, 0, 2, 3).reshape(frag_len, f * b, 3)

    # extend all F fragments in parallel: serial length T/F, batch width F*B
    local = _extend_scan(pts)
    local = local.reshape(frag_len, f, b, 3).transpose(1, 0, 2, 3)    # (F, frag_len, B, 3)

    # rigid frame at the end of each fragment (in fragment-local coordinates)
    rot_end = _frame(local[:, -3], local[:, -2], local[:, -1])        # (F, B, 3, 3)
    trans_end = local[:, -1]                                          # (F, B, 3)

    # TODO(synk): the F-step frame composition stays as a short lax.scan (F ~ 6) rather
    #             than a Pallas kernel; it is O(F) tiny 3x3 matmuls.
    def compose(carry, x):
        r_acc, t_acc = carry
        r_f, t_f = x
        nxt = (jnp.einsum("bij,bjk->bik", r_acc, r_f),
               jnp.einsum("bij,bj->bi", r_acc, t_f) + t_acc)
        return nxt, (r_acc, t_acc)

    g0 = (jnp.broadcast_to(jnp.eye(3, dtype=jnp.float32), (b, 3, 3)),
          jnp.zeros((b, 3), jnp.float32))
    _, (r_all, t_all) = lax.scan(compose, g0, (rot_end, trans_end))

    glob = jnp.einsum("fbij,flbj->flbi", r_all, local) + t_all[:, None]
    glob = glob.reshape(f * frag_len, b, 3)[:t]
    return jnp.concatenate([jnp.zeros((1, b, 3), glob.dtype), glob[: t - 1]], axis=0)


# ---- output assembly shared by Pallas path and pure-JAX reference --------------------
def _assemble_outputs(table, batch, length, point_to_coordinate_fn):
    # table: (LUT_ROWS, B*L) rows = [angles(3), point_y(3), point_z(3), pad...]
    def rows(lo):
        return table[lo:lo + 3].T.reshape(batch, length, 3).transpose(1, 0, 2)  # (L, B, 3)

    emissions = rows(0)                           # soft_to_angle(model(aa)).transpose(0, 1)
    pty, ptz = rows(3), rows(6)
    ptx = jnp.broadcast_to(jnp.asarray(R_COS_THETA), (length, batch, 3))
    points = jnp.stack([ptx, pty, ptz], axis=-1)                  # (L, B, 3 dih, 3 dim)
    points = points.transpose(0, 2, 1, 3).reshape(length * 3, batch, 3)

    coords = point_to_coordinate_fn(points) / 100.0
    backbone = coords.transpose(1, 0, 2).reshape(batch, length, 9).transpose(1, 0, 2)
    # TODO(synk): torch pack_sequence/pad_packed_sequence variable-length batching has no
    #             clean Pallas equivalent; a dense equal-length (B, L) batch is assumed.
    batch_sizes = jnp.full((batch,), length, dtype=jnp.int32)
    return emissions, backbone, batch_sizes


# ---- BaseModel.forward equivalent ----------------------------------------------------
def base_model_forward(aa_ids, lut_t, *, tile_n=1024, num_fragments=6):
    batch, length = aa_ids.shape
    n = batch * length
    n_pad = pl.cdiv(n, tile_n) * tile_n           # pad N -> no dropped tail rows
    ids = jnp.zeros((1, n_pad), jnp.int32).at[0, :n].set(aa_ids.reshape(n).astype(jnp.int32))
    table = _lookup(ids, lut_t, tile=tile_n)[:, :n]
    return _assemble_outputs(table, batch, length,
                             lambda p: _point_to_coordinate_pnerf(p, num_fragments))


def base_model_forward_ref(aa_ids, lut_t):
    # pure-JAX reference: jnp.take gather + fully serial point_to_coordinate
    batch, length = aa_ids.shape
    table = jnp.take(lut_t, aa_ids.reshape(-1), axis=1)
    return _assemble_outputs(table, batch, length, _point_to_coordinate_serial)


# ---- deterministic parameter init + 21-entry LUT precompute --------------------------
def init_params(key):
    k1, k2, k3, k4, k5 = jax.random.split(key, 5)
    w1 = 0.1 * jax.random.normal(k1, (NUM_AA, HIDDEN), jnp.float32)
    b1 = jnp.zeros((1, HIDDEN), jnp.float32)
    w2 = 0.1 * jax.random.normal(k2, (HIDDEN, MIX), jnp.float32)
    b2 = jnp.zeros((1, MIX), jnp.float32)
    phi = jax.random.uniform(k3, (MIX,), jnp.float32, -np.pi, np.pi)
    psi = jax.random.uniform(k4, (MIX,), jnp.float32, -np.pi, np.pi)
    omega = jax.random.uniform(k5, (MIX,), jnp.float32, 0.0, np.pi)
    comps = jnp.stack([phi, psi, omega], axis=1)          # (MIX, 3)
    return w1, b1, w2, b2, jnp.sin(comps), jnp.cos(comps)


def build_lut(params):
    """Run the emission MLP + softmax + soft_to_angle + dihedral_to_point trig once for
    each of the 21 amino acids (plain JAX) -> transposed (LUT_ROWS, 21) lookup table."""
    w1, b1, w2, b2, csin, ccos = params
    onehot = jnp.eye(NUM_AA, dtype=jnp.float32)
    h = jnp.tanh(onehot @ w1 + b1)
    probs = jax.nn.softmax(h @ w2 + b2, axis=-1)
    s = probs @ csin
    c = probs @ ccos
    ang = jnp.arctan2(s, c + EPS)                          # (21, 3)   soft_to_angle
    r_sin = jnp.asarray(R_SIN_THETA)
    lut_t = jnp.zeros((LUT_ROWS, NUM_AA), jnp.float32)
    lut_t = lut_t.at[0:3].set(ang.T)                       # emissions (angles)
    lut_t = lut_t.at[3:6].set((jnp.cos(ang) * r_sin).T)    # dihedral_to_point y
    lut_t = lut_t.at[6:9].set((jnp.sin(ang) * r_sin).T)    # dihedral_to_point z
    return lut_t


if __name__ == "__main__":
    key = jax.random.PRNGKey(0)
    pkey, dkey = jax.random.split(key)
    params = init_params(pkey)
    lut_t = build_lut(params)

    B, L = 2, 16
    aa_ids = jax.random.randint(dkey, (B, L), 0, NUM_AA, dtype=jnp.int32)

    fwd = jax.jit(base_model_forward, static_argnames=("tile_n", "num_fragments"))
    emissions, backbone, batch_sizes = fwd(aa_ids, lut_t, tile_n=1024, num_fragments=6)
    jax.block_until_ready((emissions, backbone, batch_sizes))

    assert emissions.shape == (L, B, 3)
    assert backbone.shape == (L, B, 9)
    assert batch_sizes.shape == (B,)
    assert bool(jnp.all(jnp.isfinite(emissions))) and bool(jnp.all(jnp.isfinite(backbone)))

    # cross-check against the pure-JAX reference (exact gather + fully serial recursion)
    e_ref, b_ref, _ = jax.jit(base_model_forward_ref)(aa_ids, lut_t)
    assert float(jnp.max(jnp.abs(emissions - e_ref))) < 1e-4
    assert float(jnp.max(jnp.abs(backbone - b_ref))) < 5e-2

    print("KERNEL_OK")
</pallas_src>

<mosaic_0001>
module attributes {stable_mosaic.version = 11 : i64} {
  func.func @_lookup_kernel(%arg0: i32, %arg1: memref<1x1024xi32, #tpu.memory_space<vmem>>, %arg2: memref<16x21xf32, #tpu.memory_space<vmem>>, %arg3: memref<16x1024xf32, #tpu.memory_space<vmem>>) attributes {dimension_semantics = [#tpu.dimension_semantics<parallel>], iteration_bounds = array<i64: 1>, scalar_prefetch = 0 : i64, scratch_operands = 0 : i64, tpu.core_type = #tpu.core_type<tc>, window_params = [{transform_indices = @transform_0, window_bounds = array<i64: 1, 1024>}, {pipeline_mode = #tpu.pipeline_mode<synchronous>, transform_indices = @transform_1, window_bounds = array<i64: 16, 21>}, {transform_indices = @transform_2, window_bounds = array<i64: 16, 1024>}]} {
    %c0 = arith.constant 0 : index
    %c0_0 = arith.constant 0 : index
    %0 = vector.load %arg1[%c0, %c0_0] : memref<1x1024xi32, #tpu.memory_space<vmem>>, vector<1x1024xi32>
    %1 = tpu.iota {dimensions = array<i32: 0>} : vector<21x1024xi32>
    %2 = vector.broadcast %0 : vector<1x1024xi32> to vector<21x1024xi32>
    %3 = arith.cmpi eq, %1, %2 : vector<21x1024xi32>
    %4 = arith.extui %3 : vector<21x1024xi1> to vector<21x1024xi32>
    %5 = arith.sitofp %4 : vector<21x1024xi32> to vector<21x1024xf32>
    %c0_1 = arith.constant 0 : index
    %c0_2 = arith.constant 0 : index
    %6 = vector.load %arg2[%c0_1, %c0_2] : memref<16x21xf32, #tpu.memory_space<vmem>>, vector<16x21xf32>
    %cst = arith.constant dense<0.000000e+00> : vector<16x1024xf32>
    %7 = tpu.matmul %6, %5, %cst {dimension_numbers = #tpu.dot_dimension_numbers<[1], [0], [0], [1], [0, 0, 1, 1], [], []>} : vector<16x21xf32>, vector<21x1024xf32>, vector<16x1024xf32> -> vector<16x1024xf32>
    %c0_3 = arith.constant 0 : index
    %c0_4 = arith.constant 0 : index
    %8 = vector.load %arg3[%c0_3, %c0_4] : memref<16x1024xf32, #tpu.memory_space<vmem>>, vector<16x1024xf32>
    tpu.vector_store %arg3[%c0_3, %c0_4], %7 {strides = array<i32>} : memref<16x1024xf32, #tpu.memory_space<vmem>>, vector<16x1024xf32>,
    return
  }
  func.func @transform_0(%arg0: i32) -> (i32, i32) {
    %c0_i32 = arith.constant 0 : i32
    %c0_i32_0 = arith.constant 0 : i32
    return %c0_i32, %arg0 : i32, i32
  }
  func.func @transform_1(%arg0: i32) -> (i32, i32) {
    %c0_i32 = arith.constant 0 : i32
    %c0_i32_0 = arith.constant 0 : i32
    %c0_i32_1 = arith.constant 0 : i32
    return %c0_i32, %c0_i32_0 : i32, i32
  }
  func.func @transform_2(%arg0: i32) -> (i32, i32) {
    %c0_i32 = arith.constant 0 : i32
    %c0_i32_0 = arith.constant 0 : i32
    return %c0_i32, %arg0 : i32, i32
  }
}

</mosaic_0001>

<bundles_post_ra>
// kernel: custom-call.2
= control target key start
LH: loop header
LB: loop body
LE: loop exit
PB: predicated region body
PF: predicated region fallthrough
CT: control target
= control target key end

     0   :  { %s6_s0 = inlined_call_operand.vmem [shape: f32[8,12,3], index: 0, kind: output, shape index: {}]  }

// kernel: custom-call
= control target key start
LH: loop header
LB: loop body
LE: loop exit
PB: predicated region body
PF: predicated region fallthrough
CT: control target
= control target key end

     0   :  { %s6_s0 = inlined_call_operand.vmem [shape: f32[12,3], index: 0, kind: output, shape index: {}]  }

// kernel: base_model_forward.1
= control target key start
LH: loop header
LB: loop body
LE: loop exit
PB: predicated region body
PF: predicated region fallthrough
CT: control target
= control target key end

     0   :  { %v12_v0 = vlaneseq  ;;  %v556_v1 = vmov 0.0   ;;  %v557_v20 = vmov 1.0|1.0   ;;  %vm129_vm11 = vcmask 1044480   ;;  %s717_s0 = inlined_call_operand.vmem [shape: s32[1,1024], index: 0, kind: input, shape index: {}]   ;;  %s718_s1 = inlined_call_operand.vmem [shape: f32[16,21], index: 1, kind: input, shape index: {}]   ;;  %s719_s2 = inlined_call_operand.vmem [shape: f32[16,1024], index: 2, kind: output, shape index: {}]  }
   0x1   :  { %218 = vmatprep.mubr.f32.mxu0 %v556_v1  ;;  %295 = vmatprep.mubr.f32.mxu1 %v556_v1  ;;  %v11_v3 = vld [vmem:[%s717_s0] sm:$0xff]  ;;  %v121_v29 = vld [vmem:[%s718_s1 + $0x8] sm:$0xff] }
   0x2   :  { %v575_v2 = vshrl.u32 %v12_v0, 7  ;;  %v120_v27 = vld [vmem:[%s718_s1] sm:$0xff] }
   0x4   :  { %v581_v4 = vadd.s32 8, %v575_v2  ;;  %v22_v5 = vsub.s32 1, %v575_v2  ;;  %v30_v6 = vsub.s32 3, %v575_v2  ;;  %v18_v7 = vsub.s32 0, %v575_v2 }
   0x5   :  { %v26_v8 = vsub.s32 2, %v575_v2  ;;  %v588_v9 = vadd.s32 16, %v575_v2  ;;  %v38_v10 = vsub.s32 5, %v575_v2  ;;  %v46_v11 = vsub.s32 7, %v575_v2 }
   0x6   :  { %v23_v12 = vrot.slane %v11_v3, %v22_v5  ;;  %v31_v13 = vrot.slane %v11_v3, %v30_v6  ;;  %v19_v14 = vrot.slane %v11_v3, %v18_v7  ;;  %v34_v15 = vsub.s32 4, %v575_v2 }
   0x7   :  { %v27_v16 = vrot.slane %v11_v3, %v26_v8  ;;  %v39_v17 = vrot.slane %v11_v3, %v38_v10  ;;  %v593_v18 = vrot.slane %v11_v3, %v46_v11  ;;  %v42_v19 = vsub.s32 6, %v575_v2 }
   0x8   :  { %vm49_vm0 = vcmp.eq.s32.totalorder %v575_v2, %v23_v12  ;;  %vm57_vm1 = vcmp.eq.s32.totalorder %v581_v4, %v23_v12  ;;  %vm51_vm2 = vcmp.eq.s32.totalorder %v575_v2, %v31_v13  ;;  %vm59_vm3 = vcmp.eq.s32.totalorder %v581_v4, %v31_v13 }
   0x9   :  { %vm538_vm4 = vmpackc.low %vm57_vm1, %vm49_vm0  ;;  %vm48_vm5 = vcmp.eq.s32.totalorder %v575_v2, %v19_v14  ;;  %vm56_vm6 = vcmp.eq.s32.totalorder %v581_v4, %v19_v14  ;;  %vm50_vm7 = vcmp.eq.s32.totalorder %v575_v2, %v27_v16  ;;  %vm58_vm8 = vcmp.eq.s32.totalorder %v581_v4, %v27_v16 }
   0xa   :  { %539 = vmatprep.subr.msk.bf16.mxu0 %vm538_vm4, %v557_v20  ;;  %vm542_vm9 = vmpackc.low %vm59_vm3, %vm51_vm2  ;;  %vm65_vm10 = vcmp.eq.s32.totalorder %v588_v9, %v23_v12  ;;  %vm67_vm12 = vcmp.eq.s32.totalorder %v588_v9, %v31_v13  ;;  %vm64_vm13 = vcmp.eq.s32.totalorder %v588_v9, %v19_v14  ;;  %vm66_vm15 = vcmp.eq.s32.totalorder %v588_v9, %v27_v16 }
   0xb   :  { %543 = vmatprep.subr.msk.bf16.mxu1 %vm542_vm9, %v557_v20  ;;  %vm540_vm14 = vmpackc.low %vm56_vm6, %vm48_vm5  ;;  %v499_v21 = vsel %vm65_vm10, 1.0, %v556_v1  ;;  %v501_v22 = vsel %vm67_vm12, 1.0, %v556_v1  ;;  %vm53_vm1 = vcmp.eq.s32.totalorder %v575_v2, %v39_v17  ;;  %vm61_vm2 = vcmp.eq.s32.totalorder %v581_v4, %v39_v17 }
   0xc   :  { %541 = vmatpush1.bf16.msk.msra.mxu0 %vm540_vm14, %v557_v20  ;;  %vm544_vm0 = vmpackc.low %vm58_vm8, %vm50_vm7  ;;  %vm55_vm3 = vcmp.eq.s32.totalorder %v575_v2, %v593_v18  ;;  %vm63_vm4 = vcmp.eq.s32.totalorder %v581_v4, %v593_v18  ;;  %v498_v23 = vsel %vm64_vm13, 1.0, %v556_v1  ;;  %v35_v24 = vrot.slane %v11_v3, %v34_v15 }
   0xd   :  { %545 = vmatpush1.bf16.msk.msra.mxu1 %vm544_vm0, %v557_v20  ;;  %510 = vmatprep.subr.msk.mxu0 %vm129_vm11, %v499_v21  ;;  %v43_v25 = vrot.slane %v11_v3, %v42_v19  ;;  %v500_v26 = vsel %vm66_vm15, 1.0, %v556_v1  ;;  %vm122_vm5 = vcmask 171008   ;;  %vm546_vm6 = vmpackc.low %vm61_vm2, %vm53_vm1  ;;  %vm69_vm14 = vcmp.eq.s32.totalorder %v588_v9, %v39_v17 }
   0xe   :  { %518 = vmatprep.subr.msk.mxu1 %vm129_vm11, %v501_v22  ;;  %vm627_vm7 = vmpackc.low %vm63_vm4, %vm55_vm3  ;;  %vm52_vm8 = vcmp.eq.s32.totalorder %v575_v2, %v35_v24  ;;  %vm60_vm9 = vcmp.eq.s32.totalorder %v581_v4, %v35_v24  ;;  %vm71_vm0 = vcmp.eq.s32.totalorder %v588_v9, %v593_v18  ;;  %vm68_vm1 = vcmp.eq.s32.totalorder %v588_v9, %v35_v24 }
   0xf   :  { %vm54_vm10 = vcmp.eq.s32.totalorder %v575_v2, %v43_v25  ;;  %vm62_vm12 = vcmp.eq.s32.totalorder %v581_v4, %v43_v25  ;;  %vm548_vm13 = vmpackc.low %vm60_vm9, %vm52_vm8  ;;  %vm70_vm2 = vcmp.eq.s32.totalorder %v588_v9, %v43_v25  ;;  %v503_v30 = vsel %vm69_vm14, 1.0, %v556_v1 }
  0x10   :  { %511 = vmatpush1.msk.msra.mxu0 %vm129_vm11, %v498_v23  ;;  %vm552_vm15 = vmpackc.low %vm62_vm12, %vm54_vm10  ;;  %v505_v31 = vsel %vm71_vm0, 1.0, %v556_v1  ;;  %v502_v32 = vsel %vm68_vm1, 1.0, %v556_v1  ;;  %v504_v33 = vsel %vm70_vm2, 1.0, %v556_v1 }
  0x11   :  { %519 = vmatpush1.msk.msra.mxu1 %vm129_vm11, %v500_v26  ;;  %512 = vmatmul.mubr.msk.f32.vlgmr.msra.gmra.mrb[0].mxu0 %vm122_vm5, %v120_v27 }
  0x12   :  { %520 = vmatmul.mubr.msk.f32.vlgmr.msra.gmra.mrb[0].mxu1 %vm122_vm5, %v120_v27  ;;  %547 = vmatprep.subr.msk.bf16.mxu0 %vm546_vm6, %v557_v20 }
  0x13   :  { %551 = vmatprep.subr.msk.bf16.mxu1 %vm627_vm7, %v557_v20  ;;  %549 = vmatpush1.bf16.msk.msra.mxu0 %vm548_vm13, %v557_v20 }
  0x14   :  { %553 = vmatpush1.bf16.msk.msra.mxu1 %vm552_vm15, %v557_v20  ;;  %224 = vmatprep.mubr.f32.mxu0 %v556_v1 }
  0x15   :  { %301 = vmatprep.mubr.f32.mxu1 %v556_v1  ;;  %513 = vmatmul.mubr.msk.f32.gmra.mrb[2].mxu0 %vm122_vm5, %v121_v29 }
  0x16   :  { %521 = vmatmul.mubr.msk.f32.gmra.mrb[2].mxu1 %vm122_vm5, %v121_v29  ;;  %526 = vmatprep.subr.msk.mxu0 %vm129_vm11, %v503_v30 }
  0x17   :  { %534 = vmatprep.subr.msk.mxu1 %vm129_vm11, %v505_v31  ;;  %527 = vmatpush1.msk.msra.mxu0 %vm129_vm11, %v502_v32 }
  0x18   :  { %535 = vmatpush1.msk.msra.mxu1 %vm129_vm11, %v504_v33  ;;  %372 = vmatprep.mubr.f32.mxu0 %v556_v1 }
  0x19   :  { %449 = vmatprep.mubr.f32.mxu1 %v556_v1  ;;  %528 = vmatmul.mubr.msk.f32.vlgmr.msra.gmra.mrb[4].mxu0 %vm122_vm5, %v120_v27 }
  0x1a   :  { %536 = vmatmul.mubr.msk.f32.vlgmr.msra.gmra.mrb[4].mxu1 %vm122_vm5, %v120_v27  ;;  %378 = vmatprep.mubr.f32.mxu0 %v556_v1 }
  0x1b   :  { %455 = vmatprep.mubr.f32.mxu1 %v556_v1 }
  0x1d   :  { %529 = vmatmul.mubr.msk.f32.gmra.mrb[6].mxu0 %vm122_vm5, %v121_v29 }
  0x1e   :  { %537 = vmatmul.mubr.msk.f32.gmra.mrb[6].mxu1 %vm122_vm5, %v121_v29 }
  0xe4   :  { %v220_v34 = vpop.f32.mrb[0].mxu0 }
  0xe5   :  { %462 = vst [vmem:[%s719_s2] sm:$0xff] %v220_v34  ;;  %v297_v35 = vpop.f32.mrb[0].mxu1  ;;  %v222_v36 = vpop.f32.mrb[1].mxu0 }
  0xe6   :  { %464 = vst [vmem:[%s719_s2 + $0x10] sm:$0xff] %v297_v35  ;;  %463 = vst [vmem:[%s719_s2 + $0x8] sm:$0xff] %v222_v36  ;;  %v299_v37 = vpop.f32.mrb[1].mxu1 }
  0xe7   :  { %465 = vst [vmem:[%s719_s2 + $0x18] sm:$0xff] %v299_v37 }
  0xe8   :  { %v226_v38 = vpop.f32.mrb[2].mxu0 }
  0xe9   :  { %470 = vst [vmem:[%s719_s2 + $0x40] sm:$0xff] %v226_v38  ;;  %v303_v39 = vpop.f32.mrb[2].mxu1  ;;  %v228_v40 = vpop.f32.mrb[3].mxu0 }
  0xea   :  { %472 = vst [vmem:[%s719_s2 + $0x50] sm:$0xff] %v303_v39  ;;  %471 = vst [vmem:[%s719_s2 + $0x48] sm:$0xff] %v228_v40  ;;  %v305_v41 = vpop.f32.mrb[3].mxu1 }
  0xeb   :  { %473 = vst [vmem:[%s719_s2 + $0x58] sm:$0xff] %v305_v41 }
  0xec   :  { %v374_v42 = vpop.f32.mrb[4].mxu0 }
  0xed   :  { %466 = vst [vmem:[%s719_s2 + $0x20] sm:$0xff] %v374_v42  ;;  %v451_v43 = vpop.f32.mrb[4].mxu1  ;;  %v376_v44 = vpop.f32.mrb[5].mxu0 }
  0xee   :  { %468 = vst [vmem:[%s719_s2 + $0x30] sm:$0xff] %v451_v43  ;;  %467 = vst [vmem:[%s719_s2 + $0x28] sm:$0xff] %v376_v44  ;;  %v453_v45 = vpop.f32.mrb[5].mxu1 }
  0xef   :  { %469 = vst [vmem:[%s719_s2 + $0x38] sm:$0xff] %v453_v45 }
  0xf0   :  { %v380_v46 = vpop.f32.mrb[6].mxu0 }
  0xf1   :  { %474 = vst [vmem:[%s719_s2 + $0x60] sm:$0xff] %v380_v46  ;;  %v457_v47 = vpop.f32.mrb[6].mxu1  ;;  %v382_v48 = vpop.f32.mrb[7].mxu0 }
  0xf2   :  { %476 = vst [vmem:[%s719_s2 + $0x70] sm:$0xff] %v457_v47  ;;  %475 = vst [vmem:[%s719_s2 + $0x68] sm:$0xff] %v382_v48  ;;  %v459_v49 = vpop.f32.mrb[7].mxu1 }
  0xf3   :  { %477 = vst [vmem:[%s719_s2 + $0x78] sm:$0xff] %v459_v49 }

// kernel: custom-call.3
= control target key start
LH: loop header
LB: loop body
LE: loop exit
PB: predicated region body
PF: predicated region fallthrough
CT: control target
= control target key end

     0   :  { %s6_s0 = inlined_call_operand.vmem [shape: bf16[6,2,3,3], index: 0, kind: output, shape index: {}]  }

// kernel: custom-call.4
= control target key start
LH: loop header
LB: loop body
LE: loop exit
PB: predicated region body
PF: predicated region fallthrough
CT: control target
= control target key end

     0   :  { %s6_s0 = inlined_call_operand.vmem [shape: f32[6,2,3], index: 0, kind: output, shape index: {}]  }

// kernel: custom-call.1
= control target key start
LH: loop header
LB: loop body
LE: loop exit
PB: predicated region body
PF: predicated region fallthrough
CT: control target
= control target key end

     0   :  { %s6_s0 = inlined_call_operand.vmem [shape: f32[2,3], index: 0, kind: output, shape index: {}]  }

</bundles_post_ra>
